<compile_context>
chip_gen: v5e
topology: v5e:2x2
jax: 0.10.0
libtpu: 0.0.40
codegen_flags: <defaults>
</compile_context>

<pallas_src>
import functools
import math

import jax
import jax.numpy as jnp
from jax.experimental import pallas as pl
from jax.experimental.pallas import tpu as pltpu


def _eca_kernel(x_ref, w_ref, o_ref, *, k, c, inv_hw):
    """x_ref/o_ref: (bb, C, HW) VMEM tiles; w_ref: (K,) SMEM conv taps."""
    x = x_ref[...]                                              # native dtype

    # Global average pool.  Accumulate in f32 without materializing an f32
    # copy of the whole tile; keepdims keeps the channel axis on sublanes.
    avg = jnp.sum(x, axis=-1, keepdims=True, dtype=jnp.float32) * inv_hw  # (bb, C, 1)

    # 1D cross-correlation over the channel (sublane) axis with zero padding
    # (matches nn.Conv1d(1, 1, k, padding=k//2, bias=False)).  k is tiny and
    # static -> unrolled taps over sublane-offset slices of the padded vector.
    pad = k // 2
    if pad > 0:
        padded = jnp.pad(avg, ((0, 0), (pad, pad), (0, 0)))     # (bb, C+2p, 1)
    else:
        padded = avg
    conv = w_ref[0] * padded[:, 0:c, :]
    for j in range(1, k):                                       # tiny, static
        conv = conv + w_ref[j] * padded[:, j:j + c, :]

    attn = jax.nn.sigmoid(conv)                                 # (bb, C, 1) f32, EUP

    # Rescale in the input dtype (bf16-native VALU on v6e/v7x); broadcasting
    # the single attention lane across HW lanes is a cheap lane-broadcast.
    o_ref[...] = (x * attn.astype(x.dtype)).astype(o_ref.dtype)


def _default_vmem_budget():
    """Budget for the double-buffered in+out slabs (bytes), VMEM-capacity aware."""
    try:
        cap = pltpu.get_tpu_info().vmem_capacity_bytes
        # Half of physical VMEM minus headroom for temporaries / other users,
        # capped so even 128 MiB chips stay well inside the scoped limit.
        return int(max(8 << 20, min(cap // 2 - (8 << 20), 48 << 20)))
    except Exception:
        return 32 << 20  # safe for v7x's 64 MiB physical VMEM


def eca_block_forward(x, conv_weight, *, vmem_block_budget=None):
    """ECA block forward. x: (B, C, H, W); conv_weight: (K,)."""
    B, C, H, W = x.shape
    K = int(conv_weight.shape[0])
    HW = H * W
    x3 = x.reshape(B, C, HW)
    conv_weight = conv_weight.reshape(K).astype(jnp.float32)
    dtype_bytes = jnp.dtype(x.dtype).itemsize

    if vmem_block_budget is None:
        vmem_block_budget = _default_vmem_budget()

    # --- block / grid selection: biggest block that fits, minimal grid steps.
    per_elem_bytes = C * HW * dtype_bytes
    # Largest batch block whose double-buffered in+out slabs fit the budget.
    max_bb = max(1, min(B, vmem_block_budget // max(1, 4 * per_elem_bytes)))
    # Keep >=2 parallel grid steps when each step still moves >=1 MiB, so both
    # v7x TensorCores get work; tiny problems collapse to a single step since
    # the ~0.35 us/step overhead would dominate.
    if B > 1 and (B // 2) * per_elem_bytes >= (1 << 20):
        max_bb = min(max_bb, B // 2)
    bb = next(d for d in range(max_bb, 0, -1) if B % d == 0)
    grid = (B // bb,)
    # TODO(synk): for very large feature maps (C*HW*dtype > ~8 MiB per batch
    # element) add channel-axis tiling with a k//2-channel halo so a single
    # block never exceeds v7x's 64 MiB VMEM; not needed at these shapes.
    # Note: H*W that is not a multiple of 128 (e.g. 7x7 late-stage maps) will
    # hit masked stores; pad the lane dim / go channels-last for those shapes.

    block_bytes = bb * per_elem_bytes
    # Explicit scoped-VMEM limit: double-buffered input + output blocks plus
    # headroom for the tiny pooled/attention temporaries.
    vmem_limit = int(min(48 * 1024 * 1024,
                         max(16 * 1024 * 1024, 4 * block_bytes + (4 << 20))))

    cost = pl.CostEstimate(
        flops=3 * B * C * HW + 2 * K * B * C,
        transcendentals=B * C,
        bytes_accessed=2 * B * C * HW * dtype_bytes + K * 4,
    )

    out = pl.pallas_call(
        functools.partial(_eca_kernel, k=K, c=C, inv_hw=1.0 / HW),
        out_shape=jax.ShapeDtypeStruct((B, C, HW), x.dtype),
        grid=grid,
        in_specs=[
            pl.BlockSpec((bb, C, HW), lambda b: (b, 0, 0)),
            pl.BlockSpec(memory_space=pltpu.MemorySpace.SMEM),
        ],
        out_specs=pl.BlockSpec((bb, C, HW), lambda b: (b, 0, 0)),
        compiler_params=pltpu.CompilerParams(
            dimension_semantics=("parallel",),
            vmem_limit_bytes=vmem_limit,
        ),
        cost_estimate=cost,
    )(x3, conv_weight)
    return out.reshape(B, C, H, W)


def eca_kernel_size(channel, gamma=2, b=1):
    k = int(abs((math.log(channel, 2) + b) / gamma))
    return k if k % 2 else k + 1


def _reference(x, w):
    # Pure-JAX reference of the PyTorch forward.
    B, C, H, W = x.shape
    k = w.shape[0]
    pad = k // 2
    avg = jnp.mean(x, axis=(2, 3))                       # (B, C)
    padded = jnp.pad(avg, ((0, 0), (pad, pad)))
    conv = jnp.zeros_like(avg)
    for j in range(k):
        conv = conv + w[j] * padded[:, j:j + C]
    attn = jax.nn.sigmoid(conv)[:, :, None, None]
    return attn * x


if __name__ == "__main__":
    key = jax.random.PRNGKey(0)
    # channels=8 -> kernel_size=3 (pad=1); channels=16 -> kernel_size=3 (pad=1)
    for (B, C, H, W) in [(2, 8, 16, 16), (4, 16, 16, 16)]:
        kx, kw, key = jax.random.split(key, 3)
        x = jax.random.normal(kx, (B, C, H, W), dtype=jnp.float32)
        K = eca_kernel_size(C)
        # Deterministic synthetic Conv1d(1, 1, K, bias=False) weight: (1,1,K) -> (K,)
        conv_weight = jax.random.normal(kw, (K,), dtype=jnp.float32) * 0.5

        out = jax.block_until_ready(eca_block_forward(x, conv_weight))

        ref = _reference(x, conv_weight)
        assert out.shape == (B, C, H, W)
        assert jnp.allclose(out, ref, atol=1e-5, rtol=1e-5)
    print("KERNEL_OK")
</pallas_src>

<mosaic_0001>
module attributes {stable_mosaic.version = 11 : i64} {
  func.func @_eca_kernel(%arg0: i32, %arg1: memref<2x8x256xf32, #tpu.memory_space<vmem>>, %arg2: memref<3xf32, #tpu.memory_space<smem>>, %arg3: memref<2x8x256xf32, #tpu.memory_space<vmem>>) attributes {dimension_semantics = [#tpu.dimension_semantics<parallel>], iteration_bounds = array<i64: 1>, scalar_prefetch = 0 : i64, scratch_operands = 0 : i64, tpu.core_type = #tpu.core_type<tc>, window_params = [{transform_indices = @transform_0, window_bounds = array<i64: 2, 8, 256>}, {transform_indices = @transform_1, window_bounds = array<i64: 3>}, {transform_indices = @transform_2, window_bounds = array<i64: 2, 8, 256>}]} {
    %c0 = arith.constant 0 : index
    %c0_0 = arith.constant 0 : index
    %c0_1 = arith.constant 0 : index
    %0 = vector.load %arg1[%c0, %c0_0, %c0_1] : memref<2x8x256xf32, #tpu.memory_space<vmem>>, vector<2x8x256xf32>
    %cst = arith.constant dense<0.000000e+00> : vector<2x8xf32>
    %1 = vector.multi_reduction <add>, %0, %cst [2] : vector<2x8x256xf32> to vector<2x8xf32>
    %2 = vector.shape_cast %1 : vector<2x8xf32> to vector<2x8x1xf32>
    %cst_2 = arith.constant 3.906250e-03 : f32
    %3 = vector.broadcast %cst_2 : f32 to vector<2x8x1xf32>
    %4 = arith.mulf %2, %3 : vector<2x8x1xf32>
    %c0_i32 = arith.constant 0 : i32
    %5 = arith.sitofp %c0_i32 : i32 to f32
    %6 = vector.broadcast %5 : f32 to vector<2x1x1xf32>
    %7 = tpu.concatenate %6, %4 in 1 : vector<2x1x1xf32>, vector<2x8x1xf32> -> vector<2x9x1xf32>
    %8 = vector.broadcast %5 : f32 to vector<2x1x1xf32>
    %9 = tpu.concatenate %7, %8 in 1 : vector<2x9x1xf32>, vector<2x1x1xf32> -> vector<2x10x1xf32>
    %c0_3 = arith.constant 0 : index
    %10 = memref.load %arg2[%c0_3] : memref<3xf32, #tpu.memory_space<smem>>
    %11 = vector.extract_strided_slice %9 {offsets = [0, 0, 0], sizes = [2, 8, 1], strides = [1, 1, 1]} : vector<2x10x1xf32> to vector<2x8x1xf32>
    %12 = vector.broadcast %10 : f32 to vector<2x8x1xf32>
    %13 = arith.mulf %12, %11 : vector<2x8x1xf32>
    %c1 = arith.constant 1 : index
    %14 = memref.load %arg2[%c1] : memref<3xf32, #tpu.memory_space<smem>>
    %15 = vector.extract_strided_slice %9 {offsets = [0, 1, 0], sizes = [2, 8, 1], strides = [1, 1, 1]} : vector<2x10x1xf32> to vector<2x8x1xf32>
    %16 = vector.broadcast %14 : f32 to vector<2x8x1xf32>
    %17 = arith.mulf %16, %15 : vector<2x8x1xf32>
    %18 = arith.addf %13, %17 : vector<2x8x1xf32>
    %c2 = arith.constant 2 : index
    %19 = memref.load %arg2[%c2] : memref<3xf32, #tpu.memory_space<smem>>
    %20 = vector.extract_strided_slice %9 {offsets = [0, 2, 0], sizes = [2, 8, 1], strides = [1, 1, 1]} : vector<2x10x1xf32> to vector<2x8x1xf32>
    %21 = vector.broadcast %19 : f32 to vector<2x8x1xf32>
    %22 = arith.mulf %21, %20 : vector<2x8x1xf32>
    %23 = arith.addf %18, %22 : vector<2x8x1xf32>
    %24 = arith.negf %23 : vector<2x8x1xf32>
    %25 = math.exp %24 : vector<2x8x1xf32>
    %cst_4 = arith.constant 1.000000e+00 : f32
    %26 = vector.broadcast %cst_4 : f32 to vector<2x8x1xf32>
    %27 = arith.addf %26, %25 : vector<2x8x1xf32>
    %28 = arith.divf %26, %27 : vector<2x8x1xf32>
    %29 = vector.broadcast %28 : vector<2x8x1xf32> to vector<2x8x256xf32>
    %30 = arith.mulf %0, %29 : vector<2x8x256xf32>
    %c0_5 = arith.constant 0 : index
    %c0_6 = arith.constant 0 : index
    %c0_7 = arith.constant 0 : index
    %31 = vector.load %arg3[%c0_5, %c0_6, %c0_7] : memref<2x8x256xf32, #tpu.memory_space<vmem>>, vector<2x8x256xf32>
    tpu.vector_store %arg3[%c0_5, %c0_6, %c0_7], %30 {strides = array<i32>} : memref<2x8x256xf32, #tpu.memory_space<vmem>>, vector<2x8x256xf32>,
    return
  }
  func.func @transform_0(%arg0: i32) -> (i32, i32, i32) {
    %c0_i32 = arith.constant 0 : i32
    %c0_i32_0 = arith.constant 0 : i32
    %c0_i32_1 = arith.constant 0 : i32
    return %arg0, %c0_i32, %c0_i32_0 : i32, i32, i32
  }
  func.func @transform_1(%arg0: i32) -> i32 {
    %c0_i32 = arith.constant 0 : i32
    %c0_i32_0 = arith.constant 0 : i32
    return %c0_i32 : i32
  }
  func.func @transform_2(%arg0: i32) -> (i32, i32, i32) {
    %c0_i32 = arith.constant 0 : i32
    %c0_i32_0 = arith.constant 0 : i32
    %c0_i32_1 = arith.constant 0 : i32
    return %arg0, %c0_i32, %c0_i32_0 : i32, i32, i32
  }
}

</mosaic_0001>

<bundles_post_ra>
// kernel: tpu_custom_call.1
= control target key start
LH: loop header
LB: loop body
LE: loop exit
PB: predicated region body
PF: predicated region fallthrough
CT: control target
= control target key end

     0   :  { %7 = vsyncpa [#allocation3], 0  ;;  %s335_s0 = inlined_call_operand.hbm [shape: f32[2,8,256], index: 0, kind: input, shape index: {}]   ;;  %s336_s1 = inlined_call_operand.hbm [shape: f32[3], index: 1, kind: input, shape index: {}]   ;;  %s337_s2 = inlined_call_operand.hbm [shape: f32[2,8,256], index: 2, kind: output, shape index: {}]  }
   0x1   :  { %8 = vsyncpa [#allocation5], 0 }
   0x2   :  { %9 = vsyncpa [#allocation4], 0  ;;  %s14_s11 = sshll.u32 %s335_s0, 4  ;;  %s272_s12 = smov [#allocation2]   ;;  %s15_s11 = int_to_ptr.hbm [resolvable:$true] %s14_s11 }
   0x3   :  { %s16_s13 = sshll.u32 %s272_s12, 4  ;;  %s28_s16 = sshll.u32 %s336_s1, 4  ;;  %s17_s13 = int_to_ptr.vmem [resolvable:$true] %s16_s13  ;;  %s29_s16 = int_to_ptr.hbm [resolvable:$true] %s28_s16 }
   0x4   :  { %s273_s17 = smov 256   ;;  %s274_s18 = smov 16  }
   0x5   :  { %22 = dma.hbm_to_vmem [thread:$0]  %s15_s11, 512, %s17_s13, [#allocation3], %s273_s17, %s273_s17, %s274_s18  }
   0x6   :  { %s275_s19 = smov [#allocation6]  }
   0x7   :  { %31 = dma.hbm_to_smem %s29_s16, 16, %s275_s19, [#allocation5]  }
   0x8   :  { %266 = dma.done.wait [#allocation3], 512  }
   0x9   :  { %267 = vsyncadd [#allocation3], 4294966784 }
   0xa   :  { %268 = dma.done.wait [#allocation5], 16  }
   0xb   :  { %269 = vsyncadd [#allocation5], 4294967280 }
   0xc   :  { %40 = sfence }
   0xd   :  { %v302_v0 = vld [vmem:[#allocation2] sm:$0xff]  ;;  %v304_v1 = vld [vmem:[#allocation2 + $0x8] sm:$0xff]  ;;  %v308_v3 = vld [vmem:[#allocation2 + $0x10] sm:$0xff]  ;;  %s186_s0 = sld [smem:[#allocation6 + $0x1]]  ;;  %vm59_vm0 = vcmask 1040384   ;;  %v276_v11 = vmov 0  }
   0xe   :  { %v45_v2 = vadd.f32 %v304_v1, %v302_v0  ;;  %v310_v4 = vld [vmem:[#allocation2 + $0x18] sm:$0xff]  ;;  %s187_s1 = sld [smem:[#allocation6 + $0x2]]  ;;  %196 = vset.pattern.permute.xlu1 %v276_v11  ;;  %197 = vset.pattern.permute.xlu0 %v276_v11  ;;  %vm78_vm1 = vcmask 1046528   ;;  %vm99_vm2 = vcmask 1045504   ;;  %s277_s21 = smov [#allocation7]  }
   0xf   :  { %v48_v5 = vadd.f32 %v310_v4, %v308_v3  ;;  %s314_s20 = sld [smem:[#allocation6]]  ;;  %s170_s22 = sshll.u32 %s277_s21, 4  ;;  %s171_s22 = int_to_ptr.vmem [resolvable:$true] %s170_s22 }
  0x10   :  { %46 = vadd.xlane.f32.xlu0 %v45_v2  ;;  %s172_s25 = sshll.u32 %s337_s2, 4  ;;  %s173_s25 = int_to_ptr.hbm [resolvable:$true] %s172_s25 }
  0x13   :  { %v69_v8 = vstv %s186_s0 }
  0x14   :  { %v90_v9 = vstv %s187_s1 }
  0x15   :  { %v65_v14 = vstv %s314_s20 }
  0x18   :  { %49 = vadd.xlane.f32.xlu0 %v48_v5 }
  0x83   :  { %v47_v6 = vpop.xlane.xlu0 %46 }
  0x84   :  { %v51_v7 = vmul.f32 0.00390625, %v47_v6 }
  0x86   :  { %v55_v10 = vrot.slane %v51_v7, 7 }
  0x88   :  { %v60_v12 = vsel %vm59_vm0, 0.0, %v55_v10  ;;  %v62_v13 = vsel %vm59_vm0, %v55_v10, 0.0 }
  0x89   :  { %v70_v15 = vmul.f32 %v69_v8, %v60_v12  ;;  %v71_v16 = vmul.f32 %v69_v8, %v62_v13  ;;  %v91_v17 = vmul.f32 %v90_v9, %v60_v12  ;;  %v92_v18 = vmul.f32 %v90_v9, %v62_v13 }
  0x8a   :  { %v66_v23 = vmul.f32 %v65_v14, %v60_v12 }
  0x8b   :  { %v79_v19 = vrot.slane %v70_v15, 1  ;;  %v80_v20 = vrot.slane %v71_v16, 1  ;;  %v100_v21 = vrot.slane %v91_v17, 2  ;;  %v50_v22 = vpop.xlane.xlu0 %49  ;;  %v101_v24 = vrot.slane %v92_v18, 2 }
  0x8c   :  { %v52_v25 = vmul.f32 0.00390625, %v50_v22 }
  0x8d   :  { %v81_v26 = vsel %vm78_vm1, %v79_v19, %v80_v20  ;;  %v102_v29 = vsel %vm99_vm2, %v100_v21, %v101_v24 }
  0x8e   :  { %v87_v27 = vadd.f32 %v81_v26, %v66_v23  ;;  %v56_v28 = vrot.slane %v52_v25, 7 }
  0x90   :  { %v108_v30 = vadd.f32 %v102_v29, %v87_v27  ;;  %v61_v31 = vsel %vm59_vm0, 0.0, %v56_v28  ;;  %v63_v32 = vsel %vm59_vm0, %v56_v28, 0.0 }
  0x91   :  { %v72_v33 = vmul.f32 %v69_v8, %v61_v31  ;;  %v73_v34 = vmul.f32 %v69_v8, %v63_v32  ;;  %v93_v35 = vmul.f32 %v90_v9, %v61_v31  ;;  %v94_v37 = vmul.f32 %v90_v9, %v63_v32 }
  0x92   :  { %v188_v36 = vmul.f32 -1.442695, %v108_v30  ;;  %v67_v41 = vmul.f32 %v65_v14, %v61_v31 }
  0x93   :  { %v82_v38 = vrot.slane %v72_v33, 1  ;;  %v83_v39 = vrot.slane %v73_v34, 1  ;;  %v103_v40 = vrot.slane %v93_v35, 2  ;;  %v104_v42 = vrot.slane %v94_v37, 2 }
  0x94   :  { %198 = vpow2.f32 %v188_v36 }
  0x95   :  { %v84_v43 = vsel %vm78_vm1, %v82_v38, %v83_v39  ;;  %v105_v45 = vsel %vm99_vm2, %v103_v40, %v104_v42 }
  0x96   :  { %v88_v44 = vadd.f32 %v84_v43, %v67_v41 }
  0x98   :  { %v109_v46 = vadd.f32 %v105_v45, %v88_v44 }
  0x9a   :  { %v199_v47 = vpop.eup %198  ;;  %v189_v48 = vmul.f32 -1.442695, %v109_v46 }
  0x9b   :  { %v116_v49 = vadd.f32 1.0, %v199_v47 }
  0x9c   :  { %200 = vpow2.f32 %v189_v48 }
  0x9d   :  { %202 = vrcp.f32 %v116_v49  ;;  %v129_v55 = vand.u32 2147483648, %v116_v49  ;;  %v127_v57 = vand.u32 2147483647, %v116_v49  ;;  %vm123_vm4 = vweird.f32 %v116_v49 }
  0x9f   :  { %v130_v60 = vor.u32 1.1754944e-38, %v129_v55  ;;  %vm128_vm6 = vcmp.eq.f32.partialorder %v127_v57, 8.507059e+37 }
  0xa2   :  { %v201_v50 = vpop.eup %200 }
  0xa3   :  { %v203_v51 = vpop.eup %202  ;;  %v117_v52 = vadd.f32 1.0, %v201_v50 }
  0xa4   :  { %v119_v53 = vmul.f32 %v203_v51, %v116_v49  ;;  %vm124_vm3 = vweird.f32 %v203_v51 }
  0xa5   :  { %204 = vrcp.f32 %v117_v52  ;;  %vm125_vm5 = vmor %vm123_vm4, %vm124_vm3  ;;  %v144_v5 = vand.u32 2147483648, %v117_v52  ;;  %v142_v7 = vand.u32 2147483647, %v117_v52  ;;  %vm138_vm8 = vweird.f32 %v117_v52 }
  0xa6   :  { %v120_v54 = vsub.f32 1.0, %v119_v53 }
  0xa7   :  { %v145_v9 = vor.u32 1.1754944e-38, %v144_v5  ;;  %vm143_vm10 = vcmp.eq.f32.partialorder %v142_v7, 8.507059e+37 }
  0xa8   :  { %v121_v56 = vmul.f32 %v203_v51, %v120_v54 }
  0xaa   :  { %v122_v58 = vadd.f32 %v203_v51, %v121_v56 }
  0xab   :  { %v205_v59 = vpop.eup %204 }
  0xac   :  { %v126_v61 = vsel %vm125_vm5, %v203_v51, %v122_v58  ;;  %v134_v62 = vmul.f32 %v205_v59, %v117_v52  ;;  %vm139_vm7 = vweird.f32 %v205_v59 }
  0xad   :  { %v131_v63 = vsel %vm128_vm6, %v130_v60, %v126_v61  ;;  %vm140_vm9 = vmor %vm138_vm8, %vm139_vm7 }
  0xae   :  { %150 = vperm.xlu1 %196, %v131_v63   ;;  %v135_v2 = vsub.f32 1.0, %v134_v62 }
  0xb0   :  { %v136_v6 = vmul.f32 %v205_v59, %v135_v2 }
  0xb2   :  { %v137_v8 = vadd.f32 %v205_v59, %v136_v6 }
  0xb4   :  { %v141_v10 = vsel %vm140_vm9, %v205_v59, %v137_v8 }
  0xb5   :  { %v146_v11 = vsel %vm143_vm10, %v145_v9, %v141_v10 }
  0xb6   :  { %155 = vperm.xlu1 %196, %v146_v11  }
 0x120   :  { %v151_v12 = vpop.permute.xlu1 %150 }
 0x121   :  { %v158_v13 = vmul.f32 %v151_v12, %v302_v0  ;;  %v159_v14 = vmul.f32 %v151_v12, %v304_v1 }
 0x123   :  { %162 = vst [vmem:[#allocation7] sm:$0xff] %v158_v13 }
 0x124   :  { %163 = vst [vmem:[#allocation7 + $0x8] sm:$0xff] %v159_v14 }
 0x128   :  { %v156_v15 = vpop.permute.xlu1 %155 }
 0x129   :  { %v160_v16 = vmul.f32 %v156_v15, %v308_v3  ;;  %v161_v17 = vmul.f32 %v156_v15, %v310_v4 }
 0x12b   :  { %164 = vst [vmem:[#allocation7 + $0x10] sm:$0xff] %v160_v16 }
 0x12c   :  { %165 = vst [vmem:[#allocation7 + $0x18] sm:$0xff] %v161_v17 }
 0x12d   :  { %178 = dma.vmem_to_hbm [thread:$0]  %s171_s22, 512, %s173_s25, [#allocation4], %s273_s17, %s273_s17, %s274_s18  }
 0x12e   :  { %270 = dma.done.wait [#allocation4], 512  }
 0x12f   :  { %271 = vsyncadd [#allocation4], 4294966784 }
 0x130   :  { %183 = vsyncpa [#allocation3], 1 }
 0x131   :  { %184 = vsyncpa [#allocation4], 1 }
 0x132   :  { %185 = vsyncpa [#allocation5], 1 }

</bundles_post_ra>
